<compile_context>
chip_gen: v7x
topology: tpu7x:2x2x1
jax: 0.10.0
libtpu: 0.0.40
codegen_flags: <defaults>
</compile_context>

<pallas_src>
import functools
import math

import jax
import jax.numpy as jnp
import numpy as np
from jax import lax
from jax.experimental import pallas as pl
from jax.experimental.pallas import tpu as pltpu


# ----------------------------------------------------------------------------
# Kernels
# ----------------------------------------------------------------------------
def _make_fast_kernel(k, n, n_pad, tb, max_iter):
    """Multiplicative Sinkhorn with exp() hoisted out of the loop.

    Carried state: V[j] = exp((g[j] - max_j g)/eps) in (0, 1].  Per-iteration
    math is identical (up to fp rounding) to the stabilized log-domain update,
    so it matches the reference; pad lanes never contribute because the single
    per-iteration divide is masked (inv_s = mask / S).
    """
    kp1 = k + 1
    nnu = [1.0] * k + [float(n - k)]          # n * nu  (python constants)
    unroll = 4

    def kernel(inv_scale_ref, scores_ref, out_ref):
        s = scores_ref[...]                                    # [tb, n_pad]
        inv_scale = inv_scale_ref[0]
        lane = lax.broadcasted_iota(jnp.int32, (1, n_pad), 1)
        real = lane < n                                        # [1, n_pad]
        mask = jnp.broadcast_to(real.astype(jnp.float32), (tb, n_pad))

        # K[j] = exp(-C[j]/eps): the ONLY full-tensor exps, outside the loop.
        # Pad lanes are set to 1 so S never vanishes there (they are excluded
        # from every reduction through `mask` anyway).
        K = []
        for j in range(kp1):
            d = s - float(k - j)
            K.append(jnp.where(real, jnp.exp(-(d * d) * inv_scale), 1.0))

        def one_iter(V):
            S = K[0] * V[0]
            for j in range(1, kp1):
                S = S + K[j] * V[j]                            # [tb, n_pad]
            inv_s = mask / S      # single full-tensor EUP op per iteration
            W = []
            for j in range(kp1):
                r = jnp.sum(K[j] * inv_s, axis=-1, keepdims=True)   # [tb, 1]
                W.append(nnu[j] / r)
            m_w = functools.reduce(jnp.maximum, W)
            inv_mw = 1.0 / m_w
            V_new = tuple(w * inv_mw for w in W)
            return V_new, inv_s, tuple(W)

        V0 = tuple(jnp.ones((tb, 1), jnp.float32) for _ in range(kp1))
        invs0 = jnp.zeros((tb, n_pad), jnp.float32)
        W0 = tuple(jnp.ones((tb, 1), jnp.float32) for _ in range(kp1))

        def body(_, carry):
            V, inv_s, W = carry
            for _u in range(unroll):
                V, inv_s, W = one_iter(V)
            return V, inv_s, W

        V, inv_s, W = lax.fori_loop(0, max_iter // unroll, body,
                                    (V0, invs0, W0))
        for _u in range(max_iter % unroll):                   # static remainder
            V, inv_s, W = one_iter(V)

        # A[j] = n*Gamma[j] = K[j] * (n*mu/S) * (nu[j]/R[j]) = K[j]*inv_s*W[j]
        # (pad lanes are exactly 0 because inv_s is masked).
        for j in range(k):
            out_ref[j] = (K[j] * inv_s * W[j]).astype(out_ref.dtype)

    return kernel


def _make_stabilized_kernel(k, n, n_pad, tb, max_iter):
    """Log-domain Sinkhorn with true-max logsumexp (tiny-epsilon fallback)."""
    kp1 = k + 1
    log_nu = [math.log(1.0 / n)] * k + [math.log((n - k) / n)]
    unroll = 2

    def kernel(inv_scale_ref, scores_ref, out_ref):
        s = scores_ref[...]                                    # [tb, n_pad]
        inv_scale = inv_scale_ref[0]
        lane = lax.broadcasted_iota(jnp.int32, (1, n_pad), 1)
        real = lane < n
        # log(mu): log(1/n) on real lanes, -inf on pad lanes (zero-mass rows).
        # F is updated before G every iteration, so pad lanes carry F=-inf by
        # the time the lane reduction runs and contribute exp(-inf)=0 exactly.
        lm = jnp.broadcast_to(
            jnp.where(real, jnp.float32(math.log(1.0 / n)), -jnp.inf),
            (tb, n_pad))

        Cn = []                                                # -C/eps slabs
        for j in range(kp1):
            d = s - float(k - j)
            Cn.append(-(d * d) * inv_scale)

        def one_iter(F, G):
            # F update: reduction over the k+1 slabs, elementwise true max.
            Z = [Cn[j] + G[j] for j in range(kp1)]
            M = functools.reduce(jnp.maximum, Z)
            S = jnp.exp(Z[0] - M)
            for j in range(1, kp1):
                S = S + jnp.exp(Z[j] - M)
            F = lm - M - jnp.log(S)                            # -inf on pads
            # G update: lane reduction with per-slab true max.
            G_new = []
            for j in range(kp1):
                Zj = Cn[j] + F
                mj = jnp.max(Zj, axis=-1, keepdims=True)       # [tb, 1]
                Tj = jnp.sum(jnp.exp(Zj - mj), axis=-1, keepdims=True)
                G_new.append(log_nu[j] - mj - jnp.log(Tj))
            return F, tuple(G_new)

        F0 = jnp.zeros((tb, n_pad), jnp.float32)
        G0 = tuple(jnp.zeros((tb, 1), jnp.float32) for _ in range(kp1))

        def body(_, carry):
            F, G = carry
            for _u in range(unroll):
                F, G = one_iter(F, G)
            return F, G

        F, G = lax.fori_loop(0, max_iter // unroll, body, (F0, G0))
        for _u in range(max_iter % unroll):
            F, G = one_iter(F, G)

        for j in range(k):
            out_ref[j] = (jnp.exp(Cn[j] + F + G[j]) * float(n)).astype(
                out_ref.dtype)

    return kernel


# ----------------------------------------------------------------------------
# Tiling / VMEM budgeting
# ----------------------------------------------------------------------------
def _estimate_vmem_bytes(tb, k, n_pad):
    kp1 = k + 1
    row = n_pad * 4
    resident = (kp1 + 5) * tb * row           # K/Cn slabs + S/invS/F/mask temps
    io = 2 * tb * row + 2 * k * tb * row      # double-buffered in/out blocks
    return resident + io + (2 << 20)


def _pick_batch_tile(bs_pad, k, n_pad, budget):
    """Largest sublane-dense batch tile within budget; prefer an even grid
    (>= 2 steps) so v7x's two TensorCores both get work."""
    cands = [d for d in range(8, bs_pad + 1, 8) if bs_pad % d == 0]
    if not cands:
        cands = [bs_pad]
    feasible = [d for d in cands if _estimate_vmem_bytes(d, k, n_pad) <= budget]
    if not feasible:
        feasible = [min(cands)]
    even = [d for d in feasible if (bs_pad // d) >= 2 and (bs_pad // d) % 2 == 0]
    multi = [d for d in feasible if (bs_pad // d) >= 2]
    if even:
        return max(even)
    if multi:
        return max(multi)
    return max(feasible)


# ----------------------------------------------------------------------------
# Wrapper
# ----------------------------------------------------------------------------
def topk_custom1_pallas(scores, k, epsilon=0.1, max_iter=200,
                        force_stabilized=False):
    """scores: [bs, n] float32  ->  A: [bs, n, k] float32
    (A == Gamma[:, :, :k] * n, the first element of the module's (A, None))."""
    scores = jnp.asarray(scores, jnp.float32)
    bs, n = scores.shape
    eps = float(epsilon)
    n_pad = ((n + 127) // 128) * 128
    bs_pad = ((bs + 7) // 8) * 8

    # ---- hoisted global preprocessing (matches the torch forward) ----------
    is_ninf = scores == -jnp.inf
    max_s = jnp.max(scores)
    min_s = jnp.min(jnp.where(is_ninf, jnp.inf, scores))
    filled = min_s - (max_s - min_s)
    s_f = jnp.where(is_ninf, filled, scores)                   # [bs, n]

    # C.max() in closed form: (s-a)^2 is convex in s and a, so its max over
    # s in [min(s_f), max(s_f)] and a in {0..k} is attained at the corners.
    min_sf = jnp.where(jnp.any(is_ninf), filled, min_s)
    max_sf = max_s
    kf = jnp.float32(k)
    c_max = jnp.maximum(jnp.maximum(max_sf * max_sf, (max_sf - kf) ** 2),
                        jnp.maximum(min_sf * min_sf, (min_sf - kf) ** 2))
    inv_scale = (1.0 / (eps * c_max)).reshape(1).astype(jnp.float32)   # SMEM

    # Sublane / lane dense padding (pad lanes are masked in-kernel; pad batch
    # rows are computed independently and discarded — nothing crosses rows).
    s_p = jnp.pad(s_f, ((0, bs_pad - bs), (0, n_pad - n)))     # [bs_pad, n_pad]

    # ---- generation-aware tiling / VMEM budgeting ---------------------------
    try:
        vmem_cap = int(pltpu.get_tpu_info().vmem_capacity_bytes)
        if vmem_cap <= 0:
            vmem_cap = 64 << 20
    except Exception:
        vmem_cap = 64 << 20                                    # v7x-safe default
    budget = (vmem_cap * 45) // 100
    tb = _pick_batch_tile(bs_pad, k, n_pad, budget)
    grid = (bs_pad // tb,)
    est = _estimate_vmem_bytes(tb, k, n_pad)
    vmem_limit = int(min(max(est + (8 << 20), 32 << 20),
                         max((vmem_cap * 60) // 100, 32 << 20)))

    # TODO(synk): for very large n (one batch row of k+1 slabs exceeding the
    # VMEM budget) the n axis would also need to be tiled.

    use_stabilized = force_stabilized or (eps <= 0.02)
    make = _make_stabilized_kernel if use_stabilized else _make_fast_kernel
    kernel = make(k, n, n_pad, tb, max_iter)

    out = pl.pallas_call(
        kernel,
        out_shape=jax.ShapeDtypeStruct((k, bs_pad, n_pad), jnp.float32),
        grid_spec=pltpu.PrefetchScalarGridSpec(
            num_scalar_prefetch=0,
            grid=grid,
            in_specs=[
                pl.BlockSpec(memory_space=pltpu.MemorySpace.SMEM),  # inv_scale
                pl.BlockSpec((tb, n_pad), lambda b: (b, 0)),        # scores
            ],
            out_specs=pl.BlockSpec((k, tb, n_pad), lambda b: (0, b, 0)),
        ),
        compiler_params=pltpu.CompilerParams(
            dimension_semantics=("parallel",),
            vmem_limit_bytes=vmem_limit,
        ),
    )(inv_scale, s_p)

    # glue: drop padding, [k, bs, n] -> [bs, n, k]
    return jnp.transpose(out[:, :bs, :n], (1, 2, 0))


# ----------------------------------------------------------------------------
# Pure-JAX reference (stabilized Sinkhorn, mirrors the PyTorch forward)
# ----------------------------------------------------------------------------
def topk_custom1_ref(scores, k, epsilon=0.1, max_iter=200):
    scores = jnp.asarray(scores, jnp.float32)
    bs, n = scores.shape
    s = scores[:, :, None]                                   # [bs, n, 1]
    is_ninf = s == -jnp.inf
    max_s = jnp.max(s)
    min_s = jnp.min(jnp.where(is_ninf, jnp.inf, s))
    filled = min_s - (max_s - min_s)
    s = jnp.where(is_ninf, filled, s)
    anchors = jnp.arange(k, -1, -1, dtype=jnp.float32).reshape(1, 1, k + 1)
    C = (s - anchors) ** 2
    C = C / jnp.max(C)
    nu = jnp.asarray([1.0 / n] * k + [(n - k) / n],
                     dtype=jnp.float32).reshape(1, 1, k + 1)
    eps = float(epsilon)
    eps_log_mu = eps * jnp.log(jnp.float32(1.0 / n))
    eps_log_nu = eps * jnp.log(nu)

    def lse(x, axis):
        return jax.scipy.special.logsumexp(x, axis=axis, keepdims=True)

    def body(i, fg):
        f, g = fg
        f = -eps * lse(-(C - g) / eps, -1) + eps_log_mu      # [bs, n, 1]
        g = -eps * lse(-(C - f) / eps, -2) + eps_log_nu      # [bs, 1, k+1]
        return f, g

    f0 = jnp.zeros((bs, n, 1), jnp.float32)
    g0 = jnp.zeros((bs, 1, k + 1), jnp.float32)
    f, g = lax.fori_loop(0, max_iter, body, (f0, g0))
    Gamma = jnp.exp((-C + f + g) / eps)
    return Gamma[:, :, :k] * n


if __name__ == "__main__":
    # Case 1: small, with a -inf score (exercises the masked-fill path).
    bs, n, k = 2, 16, 3
    scores = jax.random.normal(jax.random.PRNGKey(0), (bs, n), dtype=jnp.float32)
    scores = scores.at[0, 3].set(-jnp.inf)
    out = jax.block_until_ready(topk_custom1_pallas(scores, k=k))
    ref = jax.block_until_ready(topk_custom1_ref(scores, k=k))
    assert out.shape == (bs, n, k), out.shape
    np.testing.assert_allclose(np.asarray(out), np.asarray(ref),
                               rtol=5e-3, atol=5e-3)

    # Case 2: batch not a multiple of 8, n not a multiple of 128
    # (exercises batch/lane padding and a 2-step "parallel" grid).
    bs2, n2, k2 = 12, 200, 5
    scores2 = jax.random.normal(jax.random.PRNGKey(1), (bs2, n2),
                                dtype=jnp.float32)
    out2 = jax.block_until_ready(topk_custom1_pallas(scores2, k=k2))
    ref2 = jax.block_until_ready(topk_custom1_ref(scores2, k=k2))
    np.testing.assert_allclose(np.asarray(out2), np.asarray(ref2),
                               rtol=5e-3, atol=5e-3)

    # Case 3: the stabilized (tiny-epsilon) fallback kernel, forced on at
    # eps=0.1 so it can be checked against the same reference.
    out3 = jax.block_until_ready(
        topk_custom1_pallas(scores, k=k, force_stabilized=True))
    np.testing.assert_allclose(np.asarray(out3), np.asarray(ref),
                               rtol=5e-3, atol=5e-3)

    print("KERNEL_OK")
</pallas_src>

<mosaic_0001>
module attributes {stable_mosaic.version = 11 : i64} {
  func.func @kernel(%arg0: i32, %arg1: memref<1xf32, #tpu.memory_space<smem>>, %arg2: memref<8x128xf32, #tpu.memory_space<vmem>>, %arg3: memref<3x8x128xf32, #tpu.memory_space<vmem>>) attributes {dimension_semantics = [#tpu.dimension_semantics<parallel>], iteration_bounds = array<i64: 1>, scalar_prefetch = 0 : i64, scratch_operands = 0 : i64, tpu.core_type = #tpu.core_type<tc>, window_params = [{transform_indices = @transform_0, window_bounds = array<i64: 1>}, {transform_indices = @transform_1, window_bounds = array<i64: 8, 128>}, {transform_indices = @transform_2, window_bounds = array<i64: 3, 8, 128>}]} {
    %c0 = arith.constant 0 : index
    %c0_0 = arith.constant 0 : index
    %0 = vector.load %arg2[%c0, %c0_0] : memref<8x128xf32, #tpu.memory_space<vmem>>, vector<8x128xf32>
    %c0_1 = arith.constant 0 : index
    %1 = memref.load %arg1[%c0_1] : memref<1xf32, #tpu.memory_space<smem>>
    %2 = tpu.iota {dimensions = array<i32: 1>} : vector<1x128xi32>
    %c16_i32 = arith.constant 16 : i32
    %3 = vector.broadcast %c16_i32 : i32 to vector<1x128xi32>
    %4 = arith.cmpi slt, %2, %3 : vector<1x128xi32>
    %5 = arith.extui %4 : vector<1x128xi1> to vector<1x128xi32>
    %6 = arith.sitofp %5 : vector<1x128xi32> to vector<1x128xf32>
    %7 = vector.shape_cast %6 : vector<1x128xf32> to vector<1x128xf32>
    %8 = vector.broadcast %7 : vector<1x128xf32> to vector<8x128xf32>
    %cst = arith.constant 3.000000e+00 : f32
    %9 = vector.broadcast %cst : f32 to vector<8x128xf32>
    %10 = arith.subf %0, %9 : vector<8x128xf32>
    %11 = arith.mulf %10, %10 : vector<8x128xf32>
    %cst_2 = arith.constant 0.000000e+00 : f32
    %12 = vector.broadcast %cst_2 : f32 to vector<8x128xf32>
    %13 = arith.subf %12, %11 : vector<8x128xf32>
    %14 = vector.broadcast %1 : f32 to vector<8x128xf32>
    %15 = arith.mulf %13, %14 : vector<8x128xf32>
    %16 = math.exp %15 : vector<8x128xf32>
    %cst_3 = arith.constant 1.000000e+00 : f32
    %17 = vector.shape_cast %4 : vector<1x128xi1> to vector<1x128xi1>
    %18 = vector.broadcast %17 : vector<1x128xi1> to vector<8x128xi1>
    %19 = vector.broadcast %cst_3 : f32 to vector<8x128xf32>
    %20 = arith.select %18, %16, %19 : vector<8x128xi1>, vector<8x128xf32>
    %cst_4 = arith.constant 2.000000e+00 : f32
    %21 = vector.broadcast %cst_4 : f32 to vector<8x128xf32>
    %22 = arith.subf %0, %21 : vector<8x128xf32>
    %23 = arith.mulf %22, %22 : vector<8x128xf32>
    %cst_5 = arith.constant 0.000000e+00 : f32
    %24 = vector.broadcast %cst_5 : f32 to vector<8x128xf32>
    %25 = arith.subf %24, %23 : vector<8x128xf32>
    %26 = vector.broadcast %1 : f32 to vector<8x128xf32>
    %27 = arith.mulf %25, %26 : vector<8x128xf32>
    %28 = math.exp %27 : vector<8x128xf32>
    %cst_6 = arith.constant 1.000000e+00 : f32
    %29 = vector.shape_cast %4 : vector<1x128xi1> to vector<1x128xi1>
    %30 = vector.broadcast %29 : vector<1x128xi1> to vector<8x128xi1>
    %31 = vector.broadcast %cst_6 : f32 to vector<8x128xf32>
    %32 = arith.select %30, %28, %31 : vector<8x128xi1>, vector<8x128xf32>
    %cst_7 = arith.constant 1.000000e+00 : f32
    %33 = vector.broadcast %cst_7 : f32 to vector<8x128xf32>
    %34 = arith.subf %0, %33 : vector<8x128xf32>
    %35 = arith.mulf %34, %34 : vector<8x128xf32>
    %cst_8 = arith.constant 0.000000e+00 : f32
    %36 = vector.broadcast %cst_8 : f32 to vector<8x128xf32>
    %37 = arith.subf %36, %35 : vector<8x128xf32>
    %38 = vector.broadcast %1 : f32 to vector<8x128xf32>
    %39 = arith.mulf %37, %38 : vector<8x128xf32>
    %40 = math.exp %39 : vector<8x128xf32>
    %cst_9 = arith.constant 1.000000e+00 : f32
    %41 = vector.shape_cast %4 : vector<1x128xi1> to vector<1x128xi1>
    %42 = vector.broadcast %41 : vector<1x128xi1> to vector<8x128xi1>
    %43 = vector.broadcast %cst_9 : f32 to vector<8x128xf32>
    %44 = arith.select %42, %40, %43 : vector<8x128xi1>, vector<8x128xf32>
    %cst_10 = arith.constant 0.000000e+00 : f32
    %45 = vector.broadcast %cst_10 : f32 to vector<8x128xf32>
    %46 = arith.subf %0, %45 : vector<8x128xf32>
    %47 = arith.mulf %46, %46 : vector<8x128xf32>
    %cst_11 = arith.constant 0.000000e+00 : f32
    %48 = vector.broadcast %cst_11 : f32 to vector<8x128xf32>
    %49 = arith.subf %48, %47 : vector<8x128xf32>
    %50 = vector.broadcast %1 : f32 to vector<8x128xf32>
    %51 = arith.mulf %49, %50 : vector<8x128xf32>
    %52 = math.exp %51 : vector<8x128xf32>
    %cst_12 = arith.constant 1.000000e+00 : f32
    %53 = vector.shape_cast %4 : vector<1x128xi1> to vector<1x128xi1>
    %54 = vector.broadcast %53 : vector<1x128xi1> to vector<8x128xi1>
    %55 = vector.broadcast %cst_12 : f32 to vector<8x128xf32>
    %56 = arith.select %54, %52, %55 : vector<8x128xi1>, vector<8x128xf32>
    %cst_13 = arith.constant 1.000000e+00 : f32
    %57 = vector.broadcast %cst_13 : f32 to vector<8x1xf32>
    %cst_14 = arith.constant 1.000000e+00 : f32
    %58 = vector.broadcast %cst_14 : f32 to vector<8x1xf32>
    %cst_15 = arith.constant 1.000000e+00 : f32
    %59 = vector.broadcast %cst_15 : f32 to vector<8x1xf32>
    %cst_16 = arith.constant 1.000000e+00 : f32
    %60 = vector.broadcast %cst_16 : f32 to vector<8x1xf32>
    %cst_17 = arith.constant 0.000000e+00 : f32
    %61 = vector.broadcast %cst_17 : f32 to vector<8x128xf32>
    %cst_18 = arith.constant 1.000000e+00 : f32
    %62 = vector.broadcast %cst_18 : f32 to vector<8x1xf32>
    %cst_19 = arith.constant 1.000000e+00 : f32
    %63 = vector.broadcast %cst_19 : f32 to vector<8x1xf32>
    %cst_20 = arith.constant 1.000000e+00 : f32
    %64 = vector.broadcast %cst_20 : f32 to vector<8x1xf32>
    %c0_i32 = arith.constant 0 : i32
    %c50_i32 = arith.constant 50 : i32
    %65 = arith.addi %c0_i32, %c50_i32 : i32
    %c1_i32 = arith.constant 1 : i32
    %66:8 = scf.for %arg4 = %c0_i32 to %65 step %c1_i32 iter_args(%arg5 = %57, %arg6 = %58, %arg7 = %59, %arg8 = %60, %arg9 = %61, %arg10 = %62, %arg11 = %63, %arg12 = %64) -> (vector<8x1xf32>, vector<8x1xf32>, vector<8x1xf32>, vector<8x1xf32>, vector<8x128xf32>, vector<8x1xf32>, vector<8x1xf32>, vector<8x1xf32>)  : i32 {
      %85 = vector.broadcast %arg5 : vector<8x1xf32> to vector<8x128xf32>
      %86 = arith.mulf %20, %85 : vector<8x128xf32>
      %87 = vector.broadcast %arg6 : vector<8x1xf32> to vector<8x128xf32>
      %88 = arith.mulf %32, %87 : vector<8x128xf32>
      %89 = arith.addf %86, %88 : vector<8x128xf32>
      %90 = vector.broadcast %arg7 : vector<8x1xf32> to vector<8x128xf32>
      %91 = arith.mulf %44, %90 : vector<8x128xf32>
      %92 = arith.addf %89, %91 : vector<8x128xf32>
      %93 = vector.broadcast %arg8 : vector<8x1xf32> to vector<8x128xf32>
      %94 = arith.mulf %56, %93 : vector<8x128xf32>
      %95 = arith.addf %92, %94 : vector<8x128xf32>
      %96 = arith.divf %8, %95 : vector<8x128xf32>
      %97 = arith.mulf %20, %96 : vector<8x128xf32>
      %cst_28 = arith.constant dense<0.000000e+00> : vector<8xf32>
      %98 = vector.multi_reduction <add>, %97, %cst_28 [1] : vector<8x128xf32> to vector<8xf32>
      %99 = vector.shape_cast %98 : vector<8xf32> to vector<8x1xf32>
      %cst_29 = arith.constant 1.000000e+00 : f32
      %100 = vector.broadcast %cst_29 : f32 to vector<8x1xf32>
      %101 = arith.divf %100, %99 : vector<8x1xf32>
      %102 = arith.mulf %32, %96 : vector<8x128xf32>
      %cst_30 = arith.constant dense<0.000000e+00> : vector<8xf32>
      %103 = vector.multi_reduction <add>, %102, %cst_30 [1] : vector<8x128xf32> to vector<8xf32>
      %104 = vector.shape_cast %103 : vector<8xf32> to vector<8x1xf32>
      %cst_31 = arith.constant 1.000000e+00 : f32
      %105 = vector.broadcast %cst_31 : f32 to vector<8x1xf32>
      %106 = arith.divf %105, %104 : vector<8x1xf32>
      %107 = arith.mulf %44, %96 : vector<8x128xf32>
      %cst_32 = arith.constant dense<0.000000e+00> : vector<8xf32>
      %108 = vector.multi_reduction <add>, %107, %cst_32 [1] : vector<8x128xf32> to vector<8xf32>
      %109 = vector.shape_cast %108 : vector<8xf32> to vector<8x1xf32>
      %cst_33 = arith.constant 1.000000e+00 : f32
      %110 = vector.broadcast %cst_33 : f32 to vector<8x1xf32>
      %111 = arith.divf %110, %109 : vector<8x1xf32>
      %112 = arith.mulf %56, %96 : vector<8x128xf32>
      %cst_34 = arith.constant dense<0.000000e+00> : vector<8xf32>
      %113 = vector.multi_reduction <add>, %112, %cst_34 [1] : vector<8x128xf32> to vector<8xf32>
      %114 = vector.shape_cast %113 : vector<8xf32> to vector<8x1xf32>
      %cst_35 = arith.constant 1.300000e+01 : f32
      %115 = vector.broadcast %cst_35 : f32 to vector<8x1xf32>
      %116 = arith.divf %115, %114 : vector<8x1xf32>
      %117 = arith.maximumf %101, %106 : vector<8x1xf32>
      %118 = arith.maximumf %117, %111 : vector<8x1xf32>
      %119 = arith.maximumf %118, %116 : vector<8x1xf32>
      %cst_36 = arith.constant 1.000000e+00 : f32
      %120 = vector.broadcast %cst_36 : f32 to vector<8x1xf32>
      %121 = arith.divf %120, %119 : vector<8x1xf32>
      %122 = arith.mulf %101, %121 : vector<8x1xf32>
      %123 = arith.mulf %106, %121 : vector<8x1xf32>
      %124 = arith.mulf %111, %121 : vector<8x1xf32>
      %125 = arith.mulf %116, %121 : vector<8x1xf32>
      %126 = vector.broadcast %122 : vector<8x1xf32> to vector<8x128xf32>
      %127 = arith.mulf %20, %126 : vector<8x128xf32>
      %128 = vector.broadcast %123 : vector<8x1xf32> to vector<8x128xf32>
      %129 = arith.mulf %32, %128 : vector<8x128xf32>
      %130 = arith.addf %127, %129 : vector<8x128xf32>
      %131 = vector.broadcast %124 : vector<8x1xf32> to vector<8x128xf32>
      %132 = arith.mulf %44, %131 : vector<8x128xf32>
      %133 = arith.addf %130, %132 : vector<8x128xf32>
      %134 = vector.broadcast %125 : vector<8x1xf32> to vector<8x128xf32>
      %135 = arith.mulf %56, %134 : vector<8x128xf32>
      %136 = arith.addf %133, %135 : vector<8x128xf32>
      %137 = arith.divf %8, %136 : vector<8x128xf32>
      %138 = arith.mulf %20, %137 : vector<8x128xf32>
      %cst_37 = arith.constant dense<0.000000e+00> : vector<8xf32>
      %139 = vector.multi_reduction <add>, %138, %cst_37 [1] : vector<8x128xf32> to vector<8xf32>
      %140 = vector.shape_cast %139 : vector<8xf32> to vector<8x1xf32>
      %cst_38 = arith.constant 1.000000e+00 : f32
      %141 = vector.broadcast %cst_38 : f32 to vector<8x1xf32>
      %142 = arith.divf %141, %140 : vector<8x1xf32>
      %143 = arith.mulf %32, %137 : vector<8x128xf32>
      %cst_39 = arith.constant dense<0.000000e+00> : vector<8xf32>
      %144 = vector.multi_reduction <add>, %143, %cst_39 [1] : vector<8x128xf32> to vector<8xf32>
      %145 = vector.shape_cast %144 : vector<8xf32> to vector<8x1xf32>
      %cst_40 = arith.constant 1.000000e+00 : f32
      %146 = vector.broadcast %cst_40 : f32 to vector<8x1xf32>
      %147 = arith.divf %146, %145 : vector<8x1xf32>
      %148 = arith.mulf %44, %137 : vector<8x128xf32>
      %cst_41 = arith.constant dense<0.000000e+00> : vector<8xf32>
      %149 = vector.multi_reduction <add>, %148, %cst_41 [1] : vector<8x128xf32> to vector<8xf32>
      %150 = vector.shape_cast %149 : vector<8xf32> to vector<8x1xf32>
      %cst_42 = arith.constant 1.000000e+00 : f32
      %151 = vector.broadcast %cst_42 : f32 to vector<8x1xf32>
      %152 = arith.divf %151, %150 : vector<8x1xf32>
      %153 = arith.mulf %56, %137 : vector<8x128xf32>
      %cst_43 = arith.constant dense<0.000000e+00> : vector<8xf32>
      %154 = vector.multi_reduction <add>, %153, %cst_43 [1] : vector<8x128xf32> to vector<8xf32>
      %155 = vector.shape_cast %154 : vector<8xf32> to vector<8x1xf32>
      %cst_44 = arith.constant 1.300000e+01 : f32
      %156 = vector.broadcast %cst_44 : f32 to vector<8x1xf32>
      %157 = arith.divf %156, %155 : vector<8x1xf32>
      %158 = arith.maximumf %142, %147 : vector<8x1xf32>
      %159 = arith.maximumf %158, %152 : vector<8x1xf32>
      %160 = arith.maximumf %159, %157 : vector<8x1xf32>
      %cst_45 = arith.constant 1.000000e+00 : f32
      %161 = vector.broadcast %cst_45 : f32 to vector<8x1xf32>
      %162 = arith.divf %161, %160 : vector<8x1xf32>
      %163 = arith.mulf %142, %162 : vector<8x1xf32>
      %164 = arith.mulf %147, %162 : vector<8x1xf32>
      %165 = arith.mulf %152, %162 : vector<8x1xf32>
      %166 = arith.mulf %157, %162 : vector<8x1xf32>
      %167 = vector.broadcast %163 : vector<8x1xf32> to vector<8x128xf32>
      %168 = arith.mulf %20, %167 : vector<8x128xf32>
      %169 = vector.broadcast %164 : vector<8x1xf32> to vector<8x128xf32>
      %170 = arith.mulf %32, %169 : vector<8x128xf32>
      %171 = arith.addf %168, %170 : vector<8x128xf32>
      %172 = vector.broadcast %165 : vector<8x1xf32> to vector<8x128xf32>
      %173 = arith.mulf %44, %172 : vector<8x128xf32>
      %174 = arith.addf %171, %173 : vector<8x128xf32>
      %175 = vector.broadcast %166 : vector<8x1xf32> to vector<8x128xf32>
      %176 = arith.mulf %56, %175 : vector<8x128xf32>
      %177 = arith.addf %174, %176 : vector<8x128xf32>
      %178 = arith.divf %8, %177 : vector<8x128xf32>
      %179 = arith.mulf %20, %178 : vector<8x128xf32>
      %cst_46 = arith.constant dense<0.000000e+00> : vector<8xf32>
      %180 = vector.multi_reduction <add>, %179, %cst_46 [1] : vector<8x128xf32> to vector<8xf32>
      %181 = vector.shape_cast %180 : vector<8xf32> to vector<8x1xf32>
      %cst_47 = arith.constant 1.000000e+00 : f32
      %182 = vector.broadcast %cst_47 : f32 to vector<8x1xf32>
      %183 = arith.divf %182, %181 : vector<8x1xf32>
      %184 = arith.mulf %32, %178 : vector<8x128xf32>
      %cst_48 = arith.constant dense<0.000000e+00> : vector<8xf32>
      %185 = vector.multi_reduction <add>, %184, %cst_48 [1] : vector<8x128xf32> to vector<8xf32>
      %186 = vector.shape_cast %185 : vector<8xf32> to vector<8x1xf32>
      %cst_49 = arith.constant 1.000000e+00 : f32
      %187 = vector.broadcast %cst_49 : f32 to vector<8x1xf32>
      %188 = arith.divf %187, %186 : vector<8x1xf32>
      %189 = arith.mulf %44, %178 : vector<8x128xf32>
      %cst_50 = arith.constant dense<0.000000e+00> : vector<8xf32>
      %190 = vector.multi_reduction <add>, %189, %cst_50 [1] : vector<8x128xf32> to vector<8xf32>
      %191 = vector.shape_cast %190 : vector<8xf32> to vector<8x1xf32>
      %cst_51 = arith.constant 1.000000e+00 : f32
      %192 = vector.broadcast %cst_51 : f32 to vector<8x1xf32>
      %193 = arith.divf %192, %191 : vector<8x1xf32>
      %194 = arith.mulf %56, %178 : vector<8x128xf32>
      %cst_52 = arith.constant dense<0.000000e+00> : vector<8xf32>
      %195 = vector.multi_reduction <add>, %194, %cst_52 [1] : vector<8x128xf32> to vector<8xf32>
      %196 = vector.shape_cast %195 : vector<8xf32> to vector<8x1xf32>
      %cst_53 = arith.constant 1.300000e+01 : f32
      %197 = vector.broadcast %cst_53 : f32 to vector<8x1xf32>
      %198 = arith.divf %197, %196 : vector<8x1xf32>
      %199 = arith.maximumf %183, %188 : vector<8x1xf32>
      %200 = arith.maximumf %199, %193 : vector<8x1xf32>
      %201 = arith.maximumf %200, %198 : vector<8x1xf32>
      %cst_54 = arith.constant 1.000000e+00 : f32
      %202 = vector.broadcast %cst_54 : f32 to vector<8x1xf32>
      %203 = arith.divf %202, %201 : vector<8x1xf32>
      %204 = arith.mulf %183, %203 : vector<8x1xf32>
      %205 = arith.mulf %188, %203 : vector<8x1xf32>
      %206 = arith.mulf %193, %203 : vector<8x1xf32>
      %207 = arith.mulf %198, %203 : vector<8x1xf32>
      %208 = vector.broadcast %204 : vector<8x1xf32> to vector<8x128xf32>
      %209 = arith.mulf %20, %208 : vector<8x128xf32>
      %210 = vector.broadcast %205 : vector<8x1xf32> to vector<8x128xf32>
      %211 = arith.mulf %32, %210 : vector<8x128xf32>
      %212 = arith.addf %209, %211 : vector<8x128xf32>
      %213 = vector.broadcast %206 : vector<8x1xf32> to vector<8x128xf32>
      %214 = arith.mulf %44, %213 : vector<8x128xf32>
      %215 = arith.addf %212, %214 : vector<8x128xf32>
      %216 = vector.broadcast %207 : vector<8x1xf32> to vector<8x128xf32>
      %217 = arith.mulf %56, %216 : vector<8x128xf32>
      %218 = arith.addf %215, %217 : vector<8x128xf32>
      %219 = arith.divf %8, %218 : vector<8x128xf32>
      %220 = arith.mulf %20, %219 : vector<8x128xf32>
      %cst_55 = arith.constant dense<0.000000e+00> : vector<8xf32>
      %221 = vector.multi_reduction <add>, %220, %cst_55 [1] : vector<8x128xf32> to vector<8xf32>
      %222 = vector.shape_cast %221 : vector<8xf32> to vector<8x1xf32>
      %cst_56 = arith.constant 1.000000e+00 : f32
      %223 = vector.broadcast %cst_56 : f32 to vector<8x1xf32>
      %224 = arith.divf %223, %222 : vector<8x1xf32>
      %225 = arith.mulf %32, %219 : vector<8x128xf32>
      %cst_57 = arith.constant dense<0.000000e+00> : vector<8xf32>
      %226 = vector.multi_reduction <add>, %225, %cst_57 [1] : vector<8x128xf32> to vector<8xf32>
      %227 = vector.shape_cast %226 : vector<8xf32> to vector<8x1xf32>
      %cst_58 = arith.constant 1.000000e+00 : f32
      %228 = vector.broadcast %cst_58 : f32 to vector<8x1xf32>
      %229 = arith.divf %228, %227 : vector<8x1xf32>
      %230 = arith.mulf %44, %219 : vector<8x128xf32>
      %cst_59 = arith.constant dense<0.000000e+00> : vector<8xf32>
      %231 = vector.multi_reduction <add>, %230, %cst_59 [1] : vector<8x128xf32> to vector<8xf32>
      %232 = vector.shape_cast %231 : vector<8xf32> to vector<8x1xf32>
      %cst_60 = arith.constant 1.000000e+00 : f32
      %233 = vector.broadcast %cst_60 : f32 to vector<8x1xf32>
      %234 = arith.divf %233, %232 : vector<8x1xf32>
      %235 = arith.mulf %56, %219 : vector<8x128xf32>
      %cst_61 = arith.constant dense<0.000000e+00> : vector<8xf32>
      %236 = vector.multi_reduction <add>, %235, %cst_61 [1] : vector<8x128xf32> to vector<8xf32>
      %237 = vector.shape_cast %236 : vector<8xf32> to vector<8x1xf32>
      %cst_62 = arith.constant 1.300000e+01 : f32
      %238 = vector.broadcast %cst_62 : f32 to vector<8x1xf32>
      %239 = arith.divf %238, %237 : vector<8x1xf32>
      %240 = arith.maximumf %224, %229 : vector<8x1xf32>
      %241 = arith.maximumf %240, %234 : vector<8x1xf32>
      %242 = arith.maximumf %241, %239 : vector<8x1xf32>
      %cst_63 = arith.constant 1.000000e+00 : f32
      %243 = vector.broadcast %cst_63 : f32 to vector<8x1xf32>
      %244 = arith.divf %243, %242 : vector<8x1xf32>
      %245 = arith.mulf %224, %244 : vector<8x1xf32>
      %246 = arith.mulf %229, %244 : vector<8x1xf32>
      %247 = arith.mulf %234, %244 : vector<8x1xf32>
      %248 = arith.mulf %239, %244 : vector<8x1xf32>
      scf.yield %245, %246, %247, %248, %219, %224, %229, %234 : vector<8x1xf32>, vector<8x1xf32>, vector<8x1xf32>, vector<8x1xf32>, vector<8x128xf32>, vector<8x1xf32>, vector<8x1xf32>, vector<8x1xf32>
    }
    %67 = arith.mulf %20, %66#4 : vector<8x128xf32>
    %68 = vector.broadcast %66#5 : vector<8x1xf32> to vector<8x128xf32>
    %69 = arith.mulf %67, %68 : vector<8x128xf32>
    %c0_21 = arith.constant 0 : index
    %c0_22 = arith.constant 0 : index
    %c0_23 = arith.constant 0 : index
    %70 = vector.load %arg3[%c0_21, %c0_22, %c0_23] : memref<3x8x128xf32, #tpu.memory_space<vmem>>, vector<1x8x128xf32>
    %71 = vector.shape_cast %70 : vector<1x8x128xf32> to vector<8x128xf32>
    %72 = vector.shape_cast %69 : vector<8x128xf32> to vector<1x8x128xf32>
    tpu.vector_store %arg3[%c0_21, %c0_22, %c0_23], %72 {strides = array<i32>} : memref<3x8x128xf32, #tpu.memory_space<vmem>>, vector<1x8x128xf32>,
    %73 = arith.mulf %32, %66#4 : vector<8x128xf32>
    %74 = vector.broadcast %66#6 : vector<8x1xf32> to vector<8x128xf32>
    %75 = arith.mulf %73, %74 : vector<8x128xf32>
    %c1 = arith.constant 1 : index
    %c0_24 = arith.constant 0 : index
    %c0_25 = arith.constant 0 : index
    %76 = vector.load %arg3[%c1, %c0_24, %c0_25] : memref<3x8x128xf32, #tpu.memory_space<vmem>>, vector<1x8x128xf32>
    %77 = vector.shape_cast %76 : vector<1x8x128xf32> to vector<8x128xf32>
    %78 = vector.shape_cast %75 : vector<8x128xf32> to vector<1x8x128xf32>
    tpu.vector_store %arg3[%c1, %c0_24, %c0_25], %78 {strides = array<i32>} : memref<3x8x128xf32, #tpu.memory_space<vmem>>, vector<1x8x128xf32>,
    %79 = arith.mulf %44, %66#4 : vector<8x128xf32>
    %80 = vector.broadcast %66#7 : vector<8x1xf32> to vector<8x128xf32>
    %81 = arith.mulf %79, %80 : vector<8x128xf32>
    %c2 = arith.constant 2 : index
    %c0_26 = arith.constant 0 : index
    %c0_27 = arith.constant 0 : index
    %82 = vector.load %arg3[%c2, %c0_26, %c0_27] : memref<3x8x128xf32, #tpu.memory_space<vmem>>, vector<1x8x128xf32>
    %83 = vector.shape_cast %82 : vector<1x8x128xf32> to vector<8x128xf32>
    %84 = vector.shape_cast %81 : vector<8x128xf32> to vector<1x8x128xf32>
    tpu.vector_store %arg3[%c2, %c0_26, %c0_27], %84 {strides = array<i32>} : memref<3x8x128xf32, #tpu.memory_space<vmem>>, vector<1x8x128xf32>,
    return
  }
  func.func @transform_0(%arg0: i32) -> i32 {
    %c0_i32 = arith.constant 0 : i32
    %c0_i32_0 = arith.constant 0 : i32
    return %c0_i32 : i32
  }
  func.func @transform_1(%arg0: i32) -> (i32, i32) {
    %c0_i32 = arith.constant 0 : i32
    %c0_i32_0 = arith.constant 0 : i32
    return %arg0, %c0_i32 : i32, i32
  }
  func.func @transform_2(%arg0: i32) -> (i32, i32, i32) {
    %c0_i32 = arith.constant 0 : i32
    %c0_i32_0 = arith.constant 0 : i32
    %c0_i32_1 = arith.constant 0 : i32
    return %c0_i32, %arg0, %c0_i32_0 : i32, i32, i32
  }
}

</mosaic_0001>

<bundles_post_ra>
// kernel: tpu_custom_call.1
= control target key start
LH: loop header
LB: loop body
LE: loop exit
PB: predicated region body
PF: predicated region fallthrough
CT: control target
= control target key end

     0   :  { %8 = vsyncpa [#allocation4], 0  ;;  %s603_s0 = inlined_call_operand.<no memory space> [shape: f32[1], index: 0, kind: input, shape index: {}]   ;;  %s604_s1 = inlined_call_operand.hbm [shape: f32[8,128], index: 1, kind: input, shape index: {}]   ;;  %s605_s2 = inlined_call_operand.hbm [shape: f32[3,8,128], index: 2, kind: output, shape index: {}]  }
   0x1   :  { %9 = vsyncpa [#allocation5], 0  ;;  %s477_s9 = smov [#allocation3]   ;;  %s389_s13 = scalar_lea.hbm %s604_s1, 128 }
   0x2   :  { %s18_s10 = sshll.u32 %s477_s9, 4  ;;  %p390_p0 = scmp.ne.s32.totalorder %s604_s1, %s389_s13  ;;  %s19_s10 = int_to_ptr.vmem [resolvable:$true] %s18_s10 }
   0x3   :  { %p393_p1 = scmp.lt.u32.totalorder %s389_s13, %s604_s1 }
   0x5   :  { %p395_p2 = pnand %p393_p1, %p390_p0 }
   0x7   :  { %398 = shalt.err (!%p395_p2)
}
   0x8   :  { %s399_s18 = scalar_lea.vmem %s19_s10, 128  ;;  %p404_p4 = scmp.lt.s32.totalorder %s19_s10, %s19_s10 }
   0x9   :  { %p400_p3 = scmp.ne.s32.totalorder %s19_s10, %s399_s18  ;;  %p405_p5 = scmp.lt.s32.totalorder %s399_s18, %s399_s18 }
   0xb   :  { %p406_p6 = por %p405_p5, %p404_p4 }
   0xd   :  { %p407_p7 = pnand %p406_p6, %p400_p3 }
   0xf   :  { %410 = shalt.err (!%p407_p7)
}
  0x10   :  { %21 = dma.hbm_to_vmem [thread:$0]  %s604_s1, 128, %s19_s10, [#allocation4]  }
  0x11   :  { %453 = dma.done.wait [#allocation4], 128  }
  0x12   :  { %454 = vsyncadd [#allocation4], 4294967168  ;;  %v27_v0 = vlaneseq  ;;  %v478_v2 = vmov 0.0   ;;  %v25_v4 = vld [vmem:[#allocation3] sm:$0xff]  ;;  %v35_v9 = vstv %s603_s0  ;;  %v527_v33 = vmov 1.0   ;;  %s535_s0 = smov 0  }
  0x13   :  { %v285_v5 = vadd.f32 -3.0, %v25_v4  ;;  %v286_v6 = vadd.f32 -2.0, %v25_v4  ;;  %v287_v7 = vadd.f32 -1.0, %v25_v4  ;;  %v55_v8 = vmul.f32 %v25_v4, %v25_v4 }
  0x14   :  { %v28_v1 = vand.u32 127, %v27_v0  ;;  %v529_v34 = vmov 1.0   ;;  %v531_v35 = vmov 1.0   ;;  %v533_v36 = vmov 1.0  }
  0x15   :  { %v33_v10 = vmul.f32 %v285_v5, %v285_v5  ;;  %v42_v11 = vmul.f32 %v286_v6, %v286_v6  ;;  %v49_v12 = vmul.f32 %v287_v7, %v287_v7  ;;  %v56_v13 = vsub.f32 0.0, %v55_v8 }
  0x16   :  { %vm29_vm0 = vcmp.lt.s32.totalorder %v28_v1, 16 }
  0x17   :  { %v510_v3 = vsel %vm29_vm0, 1.0, %v478_v2  ;;  %v34_v14 = vsub.f32 0.0, %v33_v10  ;;  %v43_v15 = vsub.f32 0.0, %v42_v11  ;;  %v50_v16 = vsub.f32 0.0, %v49_v12 }
  0x18   :  { %v57_v17 = vmul.f32 %v56_v13, %v35_v9 }
  0x19   :  { %v36_v18 = vmul.f32 %v35_v9, %v34_v14  ;;  %v44_v19 = vmul.f32 %v43_v15, %v35_v9  ;;  %v51_v20 = vmul.f32 %v50_v16, %v35_v9 }
  0x1a   :  { %v58_v21 = vmul.f32 1.442695, %v57_v17 }
  0x1b   :  { %v37_v22 = vmul.f32 1.442695, %v36_v18  ;;  %v45_v23 = vmul.f32 1.442695, %v44_v19  ;;  %v52_v24 = vmul.f32 1.442695, %v51_v20 }
  0x1c   :  { %333 = vpow2.f32 %v58_v21 }
  0x1d   :  { %335 = vpow2.f32 %v37_v22 }
  0x1e   :  { %337 = vpow2.f32 %v45_v23 }
  0x1f   :  { %339 = vpow2.f32 %v52_v24 }
  0x26   :  { %v334_v25 = vpop.eup %333 }
  0x27   :  { %v516_v26 = vsel %vm29_vm0, %v334_v25, 1.0  ;;  %v336_v27 = vpop.eup %335 }
  0x28   :  { %v338_v28 = vpop.eup %337  ;;  %v519_v29 = vsel %vm29_vm0, %v336_v27, 1.0 }
  0x29   :  { %v340_v30 = vpop.eup %339  ;;  %v522_v31 = vsel %vm29_vm0, %v338_v28, 1.0 }
  0x2a   :  { %v525_v32 = vsel %vm29_vm0, %v340_v30, 1.0 }
  0x2b LB: > { %v75_v37 = vmul.f32 %v471_v36, %v519_v29  ;;  %v76_v38 = vmul.f32 %v467_v35, %v522_v31  ;;  %v78_v39 = vmul.f32 %v463_v34, %v525_v32  ;;  %v80_v41 = vmul.f32 %v459_v33, %v516_v26  ;;  %s66_s0 = sadd.s32 1, %s475_s0   ;;  %s475_s0 = sphi %s535_s0, %s66_s0   ;;  %v471_v36 = vphi %v533_v36, %v223_v36   ;;  %v467_v35 = vphi %v531_v35, %v224_v35   ;;  %v463_v34 = vphi %v529_v34, %v606_v34   ;;  %v459_v33 = vphi %v527_v33, %v226_v33  }
  0x2c   : > { %p63_p8 = scmp.ge.s32.totalorder %s66_s0, 50  }
  0x2d   : > { %v77_v40 = vadd.f32 %v76_v38, %v75_v37  ;;  %s479_s1 = smov (%p63_p8), [#allocation6]  }
  0x2e   :  { %s243_s23 = sshll.u32 (%p63_p8), %s479_s1, 4  ;;  %s244_s23 = int_to_ptr.vmem [resolvable:$true] %s243_s23 }
  0x2f   : > { %v79_v42 = vadd.f32 %v78_v39, %v77_v40  ;;  %s411_s24 = scalar_lea.vmem (%p63_p8), %s244_s23, 384  ;;  %p416_p10 = scmp.lt.s32.totalorder (%p63_p8), %s244_s23, %s244_s23 }
  0x30   :  { %p412_p9 = scmp.ne.s32.totalorder (%p63_p8), %s244_s23, %s411_s24  ;;  %p417_p11 = scmp.lt.s32.totalorder (%p63_p8), %s411_s24, %s411_s24 }
  0x31   : > { %v81_v43 = vadd.f32 %v80_v41, %v79_v42 }
  0x32   :  { %p418_p12 = por (%p63_p8), %p417_p11, %p416_p10 }
  0x33   : > { %341 = vrcp.f32 %v81_v43 }
  0x34   :  { %p419_p13 = pnand (%p63_p8), %p418_p12, %p412_p9 }
  0x3d   : > { %v342_v44 = vpop.eup %341 }
  0x3e   : > { %v83_v45 = vmul.f32 %v342_v44, %v510_v3 }
  0x40   : > { %v84_v46 = vmul.f32 %v83_v45, %v519_v29  ;;  %v94_v47 = vmul.f32 %v83_v45, %v525_v32  ;;  %v89_v48 = vmul.f32 %v83_v45, %v522_v31  ;;  %v99_v49 = vmul.f32 %v83_v45, %v516_v26 }
  0x42   : > { %85 = vadd.xlane.f32.xlu0 %v84_v46  ;;  %95 = vadd.xlane.f32.xlu1 %v94_v47 }
  0x46   : > { %90 = vadd.xlane.f32.xlu0 %v89_v48  ;;  %100 = vadd.xlane.f32.xlu1 %v99_v49 }
  0xcf   : > { %v86_v50 = vpop.xlane.xlu0 %85  ;;  %v96_v51 = vpop.xlane.xlu1 %95 }
  0xd0   : > { %343 = vrcp.f32 %v86_v50 }
  0xd3   : > { %v91_v52 = vpop.xlane.xlu0 %90  ;;  %v101_v53 = vpop.xlane.xlu1 %100 }
  0xd4   : > { %345 = vrcp.f32 %v91_v52 }
  0xd5   : > { %347 = vrcp.f32 %v101_v53 }
  0xd6   : > { %349 = vrcp.f32 %v96_v51 }
  0xda   : > { %v344_v54 = vpop.eup %343 }
  0xde   : > { %v346_v55 = vpop.eup %345 }
  0xdf   : > { %v348_v56 = vpop.eup %347  ;;  %v104_v57 = vmax.f32 %v344_v54, %v346_v55 }
  0xe0   : > { %v350_v58 = vpop.eup %349  ;;  %v103_v59 = vmul.f32 13.0, %v348_v56 }
  0xe1   : > { %v105_v60 = vmax.f32 %v104_v57, %v350_v58 }
  0xe3   : > { %v106_v61 = vmax.f32 %v105_v60, %v103_v59 }
  0xe5   : > { %351 = vrcp.f32 %v106_v61 }
  0xef   : > { %v352_v62 = vpop.eup %351 }
  0xf0   : > { %v109_v63 = vmul.f32 %v352_v62, %v344_v54  ;;  %v110_v0 = vmul.f32 %v352_v62, %v346_v55  ;;  %v111_v1 = vmul.f32 %v352_v62, %v350_v58  ;;  %v112_v2 = vmul.f32 %v352_v62, %v103_v59 }
  0xf2   : > { %v113_v4 = vmul.f32 %v109_v63, %v519_v29  ;;  %v114_v5 = vmul.f32 %v110_v0, %v522_v31  ;;  %v116_v7 = vmul.f32 %v111_v1, %v525_v32  ;;  %v118_v9 = vmul.f32 %v112_v2, %v516_v26 }
  0xf4   : > { %v115_v6 = vadd.f32 %v114_v5, %v113_v4 }
  0xf6   : > { %v117_v8 = vadd.f32 %v116_v7, %v115_v6 }
  0xf8   : > { %v119_v10 = vadd.f32 %v118_v9, %v117_v8 }
  0xfa   : > { %353 = vrcp.f32 %v119_v10 }
 0x104   : > { %v354_v11 = vpop.eup %353 }
 0x105   : > { %v121_v12 = vmul.f32 %v354_v11, %v510_v3 }
 0x107   : > { %v127_v13 = vmul.f32 %v121_v12, %v522_v31  ;;  %v122_v14 = vmul.f32 %v121_v12, %v519_v29  ;;  %v137_v15 = vmul.f32 %v121_v12, %v516_v26  ;;  %v132_v16 = vmul.f32 %v121_v12, %v525_v32 }
 0x109   : > { %128 = vadd.xlane.f32.xlu1 %v127_v13  ;;  %123 = vadd.xlane.f32.xlu0 %v122_v14 }
 0x10d   : > { %138 = vadd.xlane.f32.xlu1 %v137_v15  ;;  %133 = vadd.xlane.f32.xlu0 %v132_v16 }
 0x196   : > { %v129_v17 = vpop.xlane.xlu1 %128  ;;  %v124_v18 = vpop.xlane.xlu0 %123 }
 0x197   : > { %355 = vrcp.f32 %v129_v17 }
 0x198   : > { %357 = vrcp.f32 %v124_v18 }
 0x19a   : > { %v139_v19 = vpop.xlane.xlu1 %138  ;;  %v134_v20 = vpop.xlane.xlu0 %133 }
 0x19b   : > { %359 = vrcp.f32 %v139_v19 }
 0x19c   : > { %361 = vrcp.f32 %v134_v20 }
 0x1a1   : > { %v356_v21 = vpop.eup %355 }
 0x1a2   : > { %v358_v22 = vpop.eup %357 }
 0x1a3   : > { %v142_v24 = vmax.f32 %v358_v22, %v356_v21 }
 0x1a5   : > { %v360_v23 = vpop.eup %359 }
 0x1a6   : > { %v362_v25 = vpop.eup %361  ;;  %v141_v27 = vmul.f32 13.0, %v360_v23 }
 0x1a7   : > { %v143_v28 = vmax.f32 %v142_v24, %v362_v25 }
 0x1a9   : > { %v144_v30 = vmax.f32 %v143_v28, %v141_v27 }
 0x1ab   : > { %363 = vrcp.f32 %v144_v30 }
 0x1b5   : > { %v364_v33 = vpop.eup %363 }
 0x1b6   : > { %v147_v34 = vmul.f32 %v364_v33, %v358_v22  ;;  %v148_v35 = vmul.f32 %v364_v33, %v356_v21  ;;  %v149_v36 = vmul.f32 %v364_v33, %v362_v25  ;;  %v150_v39 = vmul.f32 %v364_v33, %v141_v27 }
 0x1b8   : > { %v151_v37 = vmul.f32 %v147_v34, %v519_v29  ;;  %v152_v38 = vmul.f32 %v148_v35, %v522_v31  ;;  %v154_v41 = vmul.f32 %v149_v36, %v525_v32  ;;  %v156_v43 = vmul.f32 %v150_v39, %v516_v26 }
 0x1ba   : > { %v153_v40 = vadd.f32 %v152_v38, %v151_v37 }
 0x1bc   : > { %v155_v42 = vadd.f32 %v154_v41, %v153_v40 }
 0x1be   : > { %v157_v44 = vadd.f32 %v156_v43, %v155_v42 }
 0x1c0   : > { %365 = vrcp.f32 %v157_v44 }
 0x1ca   : > { %v366_v45 = vpop.eup %365 }
 0x1cb   : > { %v159_v46 = vmul.f32 %v366_v45, %v510_v3 }
 0x1cd   : > { %v165_v47 = vmul.f32 %v159_v46, %v522_v31  ;;  %v160_v48 = vmul.f32 %v159_v46, %v519_v29  ;;  %v175_v49 = vmul.f32 %v159_v46, %v516_v26  ;;  %v170_v50 = vmul.f32 %v159_v46, %v525_v32 }
 0x1cf   : > { %166 = vadd.xlane.f32.xlu1 %v165_v47  ;;  %161 = vadd.xlane.f32.xlu0 %v160_v48 }
 0x1d3   : > { %176 = vadd.xlane.f32.xlu1 %v175_v49  ;;  %171 = vadd.xlane.f32.xlu0 %v170_v50 }
 0x25c   : > { %v167_v51 = vpop.xlane.xlu1 %166  ;;  %v162_v52 = vpop.xlane.xlu0 %161 }
 0x25d   : > { %367 = vrcp.f32 %v167_v51 }
 0x25e   : > { %369 = vrcp.f32 %v162_v52 }
 0x260   : > { %v177_v53 = vpop.xlane.xlu1 %176  ;;  %v172_v54 = vpop.xlane.xlu0 %171 }
 0x261   : > { %371 = vrcp.f32 %v177_v53 }
 0x262   : > { %373 = vrcp.f32 %v172_v54 }
 0x267   : > { %v368_v55 = vpop.eup %367 }
 0x268   : > { %v370_v56 = vpop.eup %369 }
 0x269   : > { %v180_v58 = vmax.f32 %v370_v56, %v368_v55 }
 0x26b   : > { %v372_v57 = vpop.eup %371 }
 0x26c   : > { %v374_v59 = vpop.eup %373  ;;  %v179_v60 = vmul.f32 13.0, %v372_v57 }
 0x26d   : > { %v181_v61 = vmax.f32 %v180_v58, %v374_v59 }
 0x26f   : > { %v182_v62 = vmax.f32 %v181_v61, %v179_v60 }
 0x271   : > { %375 = vrcp.f32 %v182_v62 }
 0x27b   : > { %v376_v63 = vpop.eup %375 }
 0x27c   : > { %v185_v0 = vmul.f32 %v376_v63, %v370_v56  ;;  %v186_v1 = vmul.f32 %v376_v63, %v368_v55  ;;  %v187_v2 = vmul.f32 %v376_v63, %v374_v59  ;;  %v188_v6 = vmul.f32 %v376_v63, %v179_v60 }
 0x27e   : > { %v189_v4 = vmul.f32 %v185_v0, %v519_v29  ;;  %v190_v5 = vmul.f32 %v186_v1, %v522_v31  ;;  %v192_v8 = vmul.f32 %v187_v2, %v525_v32  ;;  %v194_v10 = vmul.f32 %v188_v6, %v516_v26 }
 0x280   : > { %v191_v7 = vadd.f32 %v190_v5, %v189_v4 }
 0x282   : > { %v193_v9 = vadd.f32 %v192_v8, %v191_v7 }
 0x284   : > { %v195_v11 = vadd.f32 %v194_v10, %v193_v9 }
 0x286   : > { %377 = vrcp.f32 %v195_v11 }
 0x290   : > { %v378_v12 = vpop.eup %377 }
 0x291   : > { %v197_v13 = vmul.f32 %v378_v12, %v510_v3 }
 0x293   : > { %v203_v14 = vmul.f32 %v197_v13, %v522_v31  ;;  %v198_v15 = vmul.f32 %v197_v13, %v519_v29  ;;  %v213_v16 = vmul.f32 %v197_v13, %v516_v26  ;;  %v208_v17 = vmul.f32 %v197_v13, %v525_v32 }
 0x295   : > { %204 = vadd.xlane.f32.xlu1 %v203_v14  ;;  %199 = vadd.xlane.f32.xlu0 %v198_v15 }
 0x299   : > { %214 = vadd.xlane.f32.xlu1 %v213_v16  ;;  %209 = vadd.xlane.f32.xlu0 %v208_v17 }
 0x322   : > { %v205_v18 = vpop.xlane.xlu1 %204  ;;  %v200_v19 = vpop.xlane.xlu0 %199 }
 0x323   : > { %379 = vrcp.f32 %v205_v18 }
 0x324   : > { %381 = vrcp.f32 %v200_v19 }
 0x326   : > { %v215_v20 = vpop.xlane.xlu1 %214  ;;  %v210_v21 = vpop.xlane.xlu0 %209 }
 0x327   : > { %383 = vrcp.f32 %v215_v20 }
 0x328   : > { %385 = vrcp.f32 %v210_v21 }
 0x32d   : > { %v380_v22 = vpop.eup %379 }
 0x32e   : > { %v382_v23 = vpop.eup %381  ;;  %v231_v39 = vmul.f32 (%p63_p8), %v380_v22, %v203_v14 }
 0x32f   : > { %v218_v25 = vmax.f32 %v382_v23, %v380_v22  ;;  %v228_v38 = vmul.f32 (%p63_p8), %v382_v23, %v198_v15 }
 0x330   :  { %233 = vst [vmem:[#allocation6 + $0x8] sm:$0xff] (%p63_p8), %v231_v39 }
 0x331   : > { %v384_v24 = vpop.eup %383  ;;  %229 = vst [vmem:[#allocation6] sm:$0xff] (%p63_p8), %v228_v38 }
 0x332   : > { %v386_v27 = vpop.eup %385  ;;  %v217_v28 = vmul.f32 13.0, %v384_v24 }
 0x333   : > { %v219_v30 = vmax.f32 %v218_v25, %v386_v27  ;;  %v235_v40 = vmul.f32 (%p63_p8), %v386_v27, %v208_v17 }
 0x335   : > { %v220_v33 = vmax.f32 %v219_v30, %v217_v28  ;;  %237 = vst [vmem:[#allocation6 + $0x10] sm:$0xff] (%p63_p8), %v235_v40 }
 0x337   : > { %387 = vrcp.f32 %v220_v33 }
 0x33e   :  { %65 = sbr.rel (!%p63_p8) target bundleno = 43 (0x2b), region = 41 }
 0x341   : > { %v388_v34 = vpop.eup %387 }
 0x342   : > { %v223_v36 = vmul.f32 %v388_v34, %v382_v23   ;;  %v224_v35 = vmul.f32 %v388_v34, %v380_v22   ;;  %v225_v37 = vmul.f32 %v388_v34, %v386_v27   ;;  %v226_v33 = vmul.f32 %v388_v34, %v217_v28  }
 0x344   : > { %v606_v34 = vmov %v225_v37 }
 0x345   :  { %422 = shalt.err (!%p419_p13)
}
 0x346   :  { %s423_s27 = scalar_lea.hbm %s605_s2, 384 }
 0x347   :  { %p424_p0 = scmp.ne.s32.totalorder %s605_s2, %s423_s27  ;;  %p427_p1 = scmp.lt.u32.totalorder %s423_s27, %s605_s2 }
 0x349   :  { %p429_p2 = pnand %p427_p1, %p424_p0 }
 0x34b   :  { %432 = shalt.err (!%p429_p2)
}
 0x34c   :  { %s480_s4 = smov 128   ;;  %s481_s5 = smov 8  }
 0x34d   :  { %249 = dma.vmem_to_hbm [thread:$0]  %s244_s23, 384, %s605_s2, [#allocation5], %s480_s4, %s480_s4, %s481_s5  }
 0x34e   :  { %455 = dma.done.wait [#allocation5], 384  }
 0x34f   :  { %456 = vsyncadd [#allocation5], 4294966912 }
 0x350   :  { %253 = vsyncpa [#allocation4], 1 }
 0x351   :  { %254 = vsyncpa [#allocation5], 1 }

</bundles_post_ra>
